<compile_context>
chip_gen: v7x
topology: tpu7x:2x2x1
jax: 0.10.0
libtpu: 0.0.40
codegen_flags: <defaults>
</compile_context>

<pallas_src>
import functools

import jax
import jax.numpy as jnp
from jax.experimental import pallas as pl
from jax.experimental.pallas import tpu as pltpu

EPS = 1e-5                    # BatchNorm2d default eps
LANES = 128
MAX_ROWS_PER_TILE = 1024      # 1024 * 128 = 131072 pixels per grid step
VMEM_LIMIT_BYTES = 48 * 1024 * 1024


def _round_up(x, m):
    return (x + m - 1) // m * m


# ----------------------------- Pallas kernels ------------------------------

def make_stats_kernel(groups, cin):
    """Pass 1: per-tile per-channel sums and within-group Gram sums of x.
    conv1/BN statistics are reconstructed from these by linearity in glue."""
    cin_g = cin // groups

    def kernel(x_ref, stats_ref):
        # x_ref: (1, cin, rows, 128) VMEM; stats_ref: (1, 1, 1, n_stats) VMEM
        parts = []
        for c in range(cin):                                    # channel sums
            parts.append(jnp.sum(x_ref[0, c], keepdims=True))   # (1, 1)
        for g in range(groups):                                 # group Grams
            for i in range(cin_g):
                xi = x_ref[0, g * cin_g + i]                    # (rows, 128)
                for j in range(i, cin_g):
                    xj = xi if j == i else x_ref[0, g * cin_g + j]
                    parts.append(jnp.sum(xi * xj, keepdims=True))
        stats_ref[0, 0] = jnp.concatenate(parts, axis=1)        # (1, n_stats)

    return kernel


def make_apply_kernel(groups, cin):
    """Pass 2: out = relu(Weff @ x + beff) per group (conv1 * BN folded into
    conv2).  Dense per-channel (rows, 128) slabs -> one unmasked store each."""
    cin_g = cin // groups

    def kernel(x_ref, weff_ref, beff_ref, o_ref):
        # x_ref/o_ref: (1, cin, rows, 128) VMEM
        # weff_ref: (cin, cin_g) SMEM   beff_ref: (cin,) SMEM
        for ci in range(cin):
            g = ci // cin_g
            acc = x_ref[0, g * cin_g] * weff_ref[ci, 0] + beff_ref[ci]
            for j in range(1, cin_g):
                acc = acc + x_ref[0, g * cin_g + j] * weff_ref[ci, j]
            o_ref[0, ci] = jnp.maximum(acc, 0.0)

    return kernel


# ------------------------------ JAX wrapper --------------------------------

def block_forward(x_nchw, w1, b1, gamma, beta, w2, b2, *, padd=1, groups=2):
    """Forward of `Block` with defaults k=1, pad=1, stride=1."""
    N, Cin, H, W = x_nchw.shape
    Cout = w1.shape[0]
    cin_g = Cin // groups     # conv1 inputs / group  == conv2 outputs / group
    cout_g = Cout // groups   # conv1 outputs / group == conv2 inputs / group
    f32 = jnp.float32

    w1m = w1[:, :, 0, 0].astype(f32)          # (Cout, cin_g)
    w2m = w2[:, :, 0, 0].astype(f32)          # (Cin,  cout_g)
    b1 = b1.astype(f32)
    b2 = b2.astype(f32)
    gamma = gamma.astype(f32)
    beta = beta.astype(f32)

    # ---- lane-dense per-image layout: (N, Cin, rows, 128) ----
    HW = H * W
    R = (HW + LANES - 1) // LANES
    if R <= MAX_ROWS_PER_TILE:
        r_tile, R_pad = R, R                      # one tile per image
    else:
        r_tile = MAX_ROWS_PER_TILE                # multiple of 8
        R_pad = _round_up(R, r_tile)
    num_tiles = R_pad // r_tile
    # v7x: make sure the "parallel" grid has >= 2 points when possible
    if N * num_tiles == 1 and R >= 16:
        r_tile = _round_up((R + 1) // 2, 8)
        R_pad = _round_up(R, r_tile)
        num_tiles = R_pad // r_tile
    HW_pad = R_pad * LANES

    x3 = x_nchw.astype(f32).reshape(N, Cin, HW)   # free reshape of NCHW
    if HW_pad != HW:
        x3 = jnp.pad(x3, ((0, 0), (0, 0), (0, HW_pad - HW)))  # zeros: harmless
    x4 = x3.reshape(N, Cin, R_pad, LANES)

    cparams = pltpu.CompilerParams(
        dimension_semantics=("parallel", "parallel"),
        vmem_limit_bytes=VMEM_LIMIT_BYTES)
    smem_spec = pl.BlockSpec(memory_space=pltpu.MemorySpace.SMEM)
    x_spec = pl.BlockSpec((1, Cin, r_tile, LANES), lambda n, t: (n, 0, t, 0))

    # ---- pass 1: tiled per-channel sums + within-group Gram sums of x ----
    n_stats = Cin + groups * (cin_g * (cin_g + 1) // 2)
    partials = pl.pallas_call(
        make_stats_kernel(groups, Cin),
        out_shape=jax.ShapeDtypeStruct((N, num_tiles, 1, n_stats), f32),
        grid=(N, num_tiles),
        in_specs=[x_spec],
        out_specs=pl.BlockSpec((1, 1, 1, n_stats), lambda n, t: (n, t, 0, 0)),
        compiler_params=cparams,
    )(x4)
    stats_vec = jnp.sum(partials, axis=(0, 1, 2))          # (n_stats,)
    sum_x = stats_vec[:Cin]

    # ---- reconstruct conv1 statistics by linearity ----
    # d = conv1(x) - b1;  S1_c = w1_c . sum_x_g,  S2_c = w1_c^T G_g w1_c
    S1_list, S2_list = [], []
    off = Cin
    for g in range(groups):
        n_ut = cin_g * (cin_g + 1) // 2
        flat = stats_vec[off:off + n_ut]
        off += n_ut
        G = jnp.zeros((cin_g, cin_g), f32)
        k = 0
        for i in range(cin_g):
            for j in range(i, cin_g):
                G = G.at[i, j].set(flat[k])
                if i != j:
                    G = G.at[j, i].set(flat[k])
                k += 1
        w1_g = w1m[g * cout_g:(g + 1) * cout_g, :]          # (cout_g, cin_g)
        sx_g = sum_x[g * cin_g:(g + 1) * cin_g]             # (cin_g,)
        S1_list.append(w1_g @ sx_g)
        S2_list.append(jnp.einsum('ci,ij,cj->c', w1_g, G, w1_g))
    S1 = jnp.concatenate(S1_list)                           # (Cout,)
    S2 = jnp.concatenate(S2_list)                           # (Cout,)

    # conv1's zero-pad border equals b1 (d = 0) -> only changes the denominator
    P_total = N * (H + 2 * padd) * (W + 2 * padd)
    m_d = S1 / P_total                                      # E[conv1(x) - b1]
    mean = b1 + m_d
    var = S2 / P_total - m_d * m_d                          # biased (training) var
    scale = gamma * jax.lax.rsqrt(var + EPS)                # (Cout,)
    shift = (b1 - mean) * scale + beta                      # BN output at a pad pixel

    # ---- fold conv1 * BN-scale into conv2: Weff_g = W2_g diag(scale_g) W1_g ----
    weff_rows, beff_rows = [], []
    for g in range(groups):
        w1_g = w1m[g * cout_g:(g + 1) * cout_g, :]
        w2_g = w2m[g * cin_g:(g + 1) * cin_g, :]
        sc_g = scale[g * cout_g:(g + 1) * cout_g]
        sh_g = shift[g * cout_g:(g + 1) * cout_g]
        weff_rows.append(w2_g @ (sc_g[:, None] * w1_g))             # (cin_g, cin_g)
        beff_rows.append(w2_g @ sh_g + b2[g * cin_g:(g + 1) * cin_g])
    weff = jnp.concatenate(weff_rows, axis=0)               # (Cin, cin_g)
    beff = jnp.concatenate(beff_rows, axis=0)               # (Cin,)

    # ---- pass 2: interior pixels -> relu(Weff @ x + beff), fused + tiled ----
    y4 = pl.pallas_call(
        make_apply_kernel(groups, Cin),
        out_shape=jax.ShapeDtypeStruct((N, Cin, R_pad, LANES), f32),
        grid=(N, num_tiles),
        in_specs=[x_spec, smem_spec, smem_spec],
        out_specs=x_spec,
        compiler_params=cparams,
    )(x4, weff, beff)
    y_int = y4.reshape(N, Cin, HW_pad)[:, :, :HW].reshape(N, Cin, H, W)

    # ---- constant border rings (1x1 convs => per-channel constants) ----
    Ho, Wo = H + 4 * padd, W + 4 * padd
    outer_val = jnp.maximum(b2, 0.0)     # conv2 sees its own zero padding
    ring_val = jnp.maximum(beff, 0.0)    # conv2 sees BN(conv1 zero-pad) = shift
    out = jnp.broadcast_to(outer_val[None, :, None, None], (N, Cin, Ho, Wo))
    ring = jnp.broadcast_to(ring_val[None, :, None, None],
                            (N, Cin, H + 2 * padd, W + 2 * padd))
    out = out.at[:, :, padd:padd + H + 2 * padd, padd:padd + W + 2 * padd].set(ring)
    out = out.at[:, :, 2 * padd:2 * padd + H, 2 * padd:2 * padd + W].set(y_int)
    return out
    # TODO(synk): BatchNorm running_mean/running_var buffer updates (a
    # training-time side effect) are not modeled; only the forward output is
    # reproduced.


# ------------------------- pure-JAX reference (check) ----------------------

def ref_forward(x, w1, b1, gamma, beta, w2, b2, *, padd=1, groups=2):
    dn = ('NCHW', 'OIHW', 'NCHW')
    y = jax.lax.conv_general_dilated(
        x, w1, window_strides=(1, 1), padding=[(padd, padd), (padd, padd)],
        feature_group_count=groups, dimension_numbers=dn)
    y = y + b1[None, :, None, None]
    mean = jnp.mean(y, axis=(0, 2, 3), keepdims=True)
    var = jnp.mean((y - mean) ** 2, axis=(0, 2, 3), keepdims=True)
    y = ((y - mean) * jax.lax.rsqrt(var + EPS)
         * gamma[None, :, None, None] + beta[None, :, None, None])
    z = jax.lax.conv_general_dilated(
        y, w2, window_strides=(1, 1), padding=[(padd, padd), (padd, padd)],
        feature_group_count=groups, dimension_numbers=dn)
    z = z + b2[None, :, None, None]
    return jnp.maximum(z, 0.0)


# ----------------------------------- main -----------------------------------

if __name__ == "__main__":
    # Small shapes consistent with the module: dim_in=4, dim_out=8, groups=2.
    N, dim_in, dim_out, H, W = 2, 4, 8, 16, 16
    groups, padd = 2, 1

    key = jax.random.PRNGKey(0)
    kx, kw1, kb1, kg, kbt, kw2, kb2 = jax.random.split(key, 7)

    x = jax.random.normal(kx, (N, dim_in, H, W), jnp.float32)

    # Deterministic parameters (shapes follow nn.Conv2d with groups=2, k=1).
    w1 = 0.3 * jax.random.normal(kw1, (dim_out, dim_in // groups, 1, 1), jnp.float32)
    b1 = 0.1 * jax.random.normal(kb1, (dim_out,), jnp.float32)
    gamma = 1.0 + 0.1 * jax.random.normal(kg, (dim_out,), jnp.float32)
    beta = 0.05 * jax.random.normal(kbt, (dim_out,), jnp.float32)
    w2 = 0.3 * jax.random.normal(kw2, (dim_in, dim_out // groups, 1, 1), jnp.float32)
    b2 = 0.1 * jax.random.normal(kb2, (dim_in,), jnp.float32)

    fwd = jax.jit(functools.partial(block_forward, padd=padd, groups=groups))
    out = jax.block_until_ready(fwd(x, w1, b1, gamma, beta, w2, b2))

    ref = ref_forward(x, w1, b1, gamma, beta, w2, b2, padd=padd, groups=groups)
    assert out.shape == (N, dim_in, H + 4 * padd, W + 4 * padd), out.shape
    max_err = float(jnp.max(jnp.abs(out - ref)))
    assert jnp.allclose(out, ref, rtol=2e-3, atol=2e-3), max_err

    print("KERNEL_OK")
</pallas_src>

<mosaic_0001>
module attributes {stable_mosaic.version = 11 : i64} {
  func.func @kernel(%arg0: i32, %arg1: i32, %arg2: memref<1x4x2x128xf32, #tpu.memory_space<vmem>>, %arg3: memref<1x1x1x10xf32, #tpu.memory_space<vmem>>) attributes {dimension_semantics = [#tpu.dimension_semantics<parallel>, #tpu.dimension_semantics<parallel>], iteration_bounds = array<i64: 2, 1>, scalar_prefetch = 0 : i64, scratch_operands = 0 : i64, tpu.core_type = #tpu.core_type<tc>, window_params = [{transform_indices = @transform_0, window_bounds = array<i64: 1, 4, 2, 128>}, {transform_indices = @transform_1, window_bounds = array<i64: 1, 1, 1, 10>}]} {
    %c0 = arith.constant 0 : index
    %c0_0 = arith.constant 0 : index
    %c0_1 = arith.constant 0 : index
    %c0_2 = arith.constant 0 : index
    %0 = vector.load %arg2[%c0, %c0_0, %c0_1, %c0_2] : memref<1x4x2x128xf32, #tpu.memory_space<vmem>>, vector<1x1x2x128xf32>
    %1 = vector.shape_cast %0 : vector<1x1x2x128xf32> to vector<2x128xf32>
    %2 = vector.shape_cast %1 : vector<2x128xf32> to vector<1x2x128xf32>
    %cst = arith.constant dense<0.000000e+00> : vector<1xf32>
    %3 = vector.multi_reduction <add>, %2, %cst [1, 2] : vector<1x2x128xf32> to vector<1xf32>
    %4 = vector.shape_cast %3 : vector<1xf32> to vector<1x1x1xf32>
    %5 = vector.extract %4[0, 0, 0] : f32 from vector<1x1x1xf32>
    %6 = vector.broadcast %5 : f32 to vector<1x1xf32>
    %c0_3 = arith.constant 0 : index
    %c1 = arith.constant 1 : index
    %c0_4 = arith.constant 0 : index
    %c0_5 = arith.constant 0 : index
    %7 = vector.load %arg2[%c0_3, %c1, %c0_4, %c0_5] : memref<1x4x2x128xf32, #tpu.memory_space<vmem>>, vector<1x1x2x128xf32>
    %8 = vector.shape_cast %7 : vector<1x1x2x128xf32> to vector<2x128xf32>
    %9 = vector.shape_cast %8 : vector<2x128xf32> to vector<1x2x128xf32>
    %cst_6 = arith.constant dense<0.000000e+00> : vector<1xf32>
    %10 = vector.multi_reduction <add>, %9, %cst_6 [1, 2] : vector<1x2x128xf32> to vector<1xf32>
    %11 = vector.shape_cast %10 : vector<1xf32> to vector<1x1x1xf32>
    %12 = vector.extract %11[0, 0, 0] : f32 from vector<1x1x1xf32>
    %13 = vector.broadcast %12 : f32 to vector<1x1xf32>
    %c0_7 = arith.constant 0 : index
    %c2 = arith.constant 2 : index
    %c0_8 = arith.constant 0 : index
    %c0_9 = arith.constant 0 : index
    %14 = vector.load %arg2[%c0_7, %c2, %c0_8, %c0_9] : memref<1x4x2x128xf32, #tpu.memory_space<vmem>>, vector<1x1x2x128xf32>
    %15 = vector.shape_cast %14 : vector<1x1x2x128xf32> to vector<2x128xf32>
    %16 = vector.shape_cast %15 : vector<2x128xf32> to vector<1x2x128xf32>
    %cst_10 = arith.constant dense<0.000000e+00> : vector<1xf32>
    %17 = vector.multi_reduction <add>, %16, %cst_10 [1, 2] : vector<1x2x128xf32> to vector<1xf32>
    %18 = vector.shape_cast %17 : vector<1xf32> to vector<1x1x1xf32>
    %19 = vector.extract %18[0, 0, 0] : f32 from vector<1x1x1xf32>
    %20 = vector.broadcast %19 : f32 to vector<1x1xf32>
    %c0_11 = arith.constant 0 : index
    %c3 = arith.constant 3 : index
    %c0_12 = arith.constant 0 : index
    %c0_13 = arith.constant 0 : index
    %21 = vector.load %arg2[%c0_11, %c3, %c0_12, %c0_13] : memref<1x4x2x128xf32, #tpu.memory_space<vmem>>, vector<1x1x2x128xf32>
    %22 = vector.shape_cast %21 : vector<1x1x2x128xf32> to vector<2x128xf32>
    %23 = vector.shape_cast %22 : vector<2x128xf32> to vector<1x2x128xf32>
    %cst_14 = arith.constant dense<0.000000e+00> : vector<1xf32>
    %24 = vector.multi_reduction <add>, %23, %cst_14 [1, 2] : vector<1x2x128xf32> to vector<1xf32>
    %25 = vector.shape_cast %24 : vector<1xf32> to vector<1x1x1xf32>
    %26 = vector.extract %25[0, 0, 0] : f32 from vector<1x1x1xf32>
    %27 = vector.broadcast %26 : f32 to vector<1x1xf32>
    %c0_15 = arith.constant 0 : index
    %c0_16 = arith.constant 0 : index
    %c0_17 = arith.constant 0 : index
    %c0_18 = arith.constant 0 : index
    %28 = vector.load %arg2[%c0_15, %c0_16, %c0_17, %c0_18] : memref<1x4x2x128xf32, #tpu.memory_space<vmem>>, vector<1x1x2x128xf32>
    %29 = vector.shape_cast %28 : vector<1x1x2x128xf32> to vector<2x128xf32>
    %30 = arith.mulf %29, %29 : vector<2x128xf32>
    %31 = vector.shape_cast %30 : vector<2x128xf32> to vector<1x2x128xf32>
    %cst_19 = arith.constant dense<0.000000e+00> : vector<1xf32>
    %32 = vector.multi_reduction <add>, %31, %cst_19 [1, 2] : vector<1x2x128xf32> to vector<1xf32>
    %33 = vector.shape_cast %32 : vector<1xf32> to vector<1x1x1xf32>
    %34 = vector.extract %33[0, 0, 0] : f32 from vector<1x1x1xf32>
    %35 = vector.broadcast %34 : f32 to vector<1x1xf32>
    %c0_20 = arith.constant 0 : index
    %c1_21 = arith.constant 1 : index
    %c0_22 = arith.constant 0 : index
    %c0_23 = arith.constant 0 : index
    %36 = vector.load %arg2[%c0_20, %c1_21, %c0_22, %c0_23] : memref<1x4x2x128xf32, #tpu.memory_space<vmem>>, vector<1x1x2x128xf32>
    %37 = vector.shape_cast %36 : vector<1x1x2x128xf32> to vector<2x128xf32>
    %38 = arith.mulf %29, %37 : vector<2x128xf32>
    %39 = vector.shape_cast %38 : vector<2x128xf32> to vector<1x2x128xf32>
    %cst_24 = arith.constant dense<0.000000e+00> : vector<1xf32>
    %40 = vector.multi_reduction <add>, %39, %cst_24 [1, 2] : vector<1x2x128xf32> to vector<1xf32>
    %41 = vector.shape_cast %40 : vector<1xf32> to vector<1x1x1xf32>
    %42 = vector.extract %41[0, 0, 0] : f32 from vector<1x1x1xf32>
    %43 = vector.broadcast %42 : f32 to vector<1x1xf32>
    %c0_25 = arith.constant 0 : index
    %c1_26 = arith.constant 1 : index
    %c0_27 = arith.constant 0 : index
    %c0_28 = arith.constant 0 : index
    %44 = vector.load %arg2[%c0_25, %c1_26, %c0_27, %c0_28] : memref<1x4x2x128xf32, #tpu.memory_space<vmem>>, vector<1x1x2x128xf32>
    %45 = vector.shape_cast %44 : vector<1x1x2x128xf32> to vector<2x128xf32>
    %46 = arith.mulf %45, %45 : vector<2x128xf32>
    %47 = vector.shape_cast %46 : vector<2x128xf32> to vector<1x2x128xf32>
    %cst_29 = arith.constant dense<0.000000e+00> : vector<1xf32>
    %48 = vector.multi_reduction <add>, %47, %cst_29 [1, 2] : vector<1x2x128xf32> to vector<1xf32>
    %49 = vector.shape_cast %48 : vector<1xf32> to vector<1x1x1xf32>
    %50 = vector.extract %49[0, 0, 0] : f32 from vector<1x1x1xf32>
    %51 = vector.broadcast %50 : f32 to vector<1x1xf32>
    %c0_30 = arith.constant 0 : index
    %c2_31 = arith.constant 2 : index
    %c0_32 = arith.constant 0 : index
    %c0_33 = arith.constant 0 : index
    %52 = vector.load %arg2[%c0_30, %c2_31, %c0_32, %c0_33] : memref<1x4x2x128xf32, #tpu.memory_space<vmem>>, vector<1x1x2x128xf32>
    %53 = vector.shape_cast %52 : vector<1x1x2x128xf32> to vector<2x128xf32>
    %54 = arith.mulf %53, %53 : vector<2x128xf32>
    %55 = vector.shape_cast %54 : vector<2x128xf32> to vector<1x2x128xf32>
    %cst_34 = arith.constant dense<0.000000e+00> : vector<1xf32>
    %56 = vector.multi_reduction <add>, %55, %cst_34 [1, 2] : vector<1x2x128xf32> to vector<1xf32>
    %57 = vector.shape_cast %56 : vector<1xf32> to vector<1x1x1xf32>
    %58 = vector.extract %57[0, 0, 0] : f32 from vector<1x1x1xf32>
    %59 = vector.broadcast %58 : f32 to vector<1x1xf32>
    %c0_35 = arith.constant 0 : index
    %c3_36 = arith.constant 3 : index
    %c0_37 = arith.constant 0 : index
    %c0_38 = arith.constant 0 : index
    %60 = vector.load %arg2[%c0_35, %c3_36, %c0_37, %c0_38] : memref<1x4x2x128xf32, #tpu.memory_space<vmem>>, vector<1x1x2x128xf32>
    %61 = vector.shape_cast %60 : vector<1x1x2x128xf32> to vector<2x128xf32>
    %62 = arith.mulf %53, %61 : vector<2x128xf32>
    %63 = vector.shape_cast %62 : vector<2x128xf32> to vector<1x2x128xf32>
    %cst_39 = arith.constant dense<0.000000e+00> : vector<1xf32>
    %64 = vector.multi_reduction <add>, %63, %cst_39 [1, 2] : vector<1x2x128xf32> to vector<1xf32>
    %65 = vector.shape_cast %64 : vector<1xf32> to vector<1x1x1xf32>
    %66 = vector.extract %65[0, 0, 0] : f32 from vector<1x1x1xf32>
    %67 = vector.broadcast %66 : f32 to vector<1x1xf32>
    %c0_40 = arith.constant 0 : index
    %c3_41 = arith.constant 3 : index
    %c0_42 = arith.constant 0 : index
    %c0_43 = arith.constant 0 : index
    %68 = vector.load %arg2[%c0_40, %c3_41, %c0_42, %c0_43] : memref<1x4x2x128xf32, #tpu.memory_space<vmem>>, vector<1x1x2x128xf32>
    %69 = vector.shape_cast %68 : vector<1x1x2x128xf32> to vector<2x128xf32>
    %70 = arith.mulf %69, %69 : vector<2x128xf32>
    %71 = vector.shape_cast %70 : vector<2x128xf32> to vector<1x2x128xf32>
    %cst_44 = arith.constant dense<0.000000e+00> : vector<1xf32>
    %72 = vector.multi_reduction <add>, %71, %cst_44 [1, 2] : vector<1x2x128xf32> to vector<1xf32>
    %73 = vector.shape_cast %72 : vector<1xf32> to vector<1x1x1xf32>
    %74 = vector.extract %73[0, 0, 0] : f32 from vector<1x1x1xf32>
    %75 = vector.broadcast %74 : f32 to vector<1x1xf32>
    %76 = tpu.concatenate %6, %13, %20, %27, %35, %43, %51, %59, %67, %75 in 1 : vector<1x1xf32>, vector<1x1xf32>, vector<1x1xf32>, vector<1x1xf32>, vector<1x1xf32>, vector<1x1xf32>, vector<1x1xf32>, vector<1x1xf32>, vector<1x1xf32>, vector<1x1xf32> -> vector<1x10xf32>
    %c0_45 = arith.constant 0 : index
    %c0_46 = arith.constant 0 : index
    %c0_47 = arith.constant 0 : index
    %c0_48 = arith.constant 0 : index
    %77 = vector.load %arg3[%c0_45, %c0_46, %c0_47, %c0_48] : memref<1x1x1x10xf32, #tpu.memory_space<vmem>>, vector<1x1x1x10xf32>
    %78 = vector.shape_cast %77 : vector<1x1x1x10xf32> to vector<1x10xf32>
    %79 = vector.shape_cast %76 : vector<1x10xf32> to vector<1x1x1x10xf32>
    tpu.vector_store %arg3[%c0_45, %c0_46, %c0_47, %c0_48], %79 {strides = array<i32>} : memref<1x1x1x10xf32, #tpu.memory_space<vmem>>, vector<1x1x1x10xf32>,
    return
  }
  func.func @transform_0(%arg0: i32, %arg1: i32) -> (i32, i32, i32, i32) {
    %c0_i32 = arith.constant 0 : i32
    %c0_i32_0 = arith.constant 0 : i32
    %c0_i32_1 = arith.constant 0 : i32
    return %arg0, %c0_i32, %arg1, %c0_i32_0 : i32, i32, i32, i32
  }
  func.func @transform_1(%arg0: i32, %arg1: i32) -> (i32, i32, i32, i32) {
    %c0_i32 = arith.constant 0 : i32
    %c0_i32_0 = arith.constant 0 : i32
    %c0_i32_1 = arith.constant 0 : i32
    return %arg0, %arg1, %c0_i32, %c0_i32_0 : i32, i32, i32, i32
  }
}

module attributes {stable_mosaic.version = 11 : i64} {
  func.func @kernel(%arg0: i32, %arg1: i32, %arg2: memref<1x4x2x128xf32, #tpu.memory_space<vmem>>, %arg3: memref<4x2xf32, #tpu.memory_space<smem>>, %arg4: memref<4xf32, #tpu.memory_space<smem>>, %arg5: memref<1x4x2x128xf32, #tpu.memory_space<vmem>>) attributes {dimension_semantics = [#tpu.dimension_semantics<parallel>, #tpu.dimension_semantics<parallel>], iteration_bounds = array<i64: 2, 1>, scalar_prefetch = 0 : i64, scratch_operands = 0 : i64, tpu.core_type = #tpu.core_type<tc>, window_params = [{transform_indices = @transform_0, window_bounds = array<i64: 1, 4, 2, 128>}, {transform_indices = @transform_1, window_bounds = array<i64: 4, 2>}, {transform_indices = @transform_2, window_bounds = array<i64: 4>}, {transform_indices = @transform_3, window_bounds = array<i64: 1, 4, 2, 128>}]} {
    %c0 = arith.constant 0 : index
    %c0_0 = arith.constant 0 : index
    %c0_1 = arith.constant 0 : index
    %c0_2 = arith.constant 0 : index
    %0 = vector.load %arg2[%c0, %c0_0, %c0_1, %c0_2] : memref<1x4x2x128xf32, #tpu.memory_space<vmem>>, vector<1x1x2x128xf32>
    %1 = vector.shape_cast %0 : vector<1x1x2x128xf32> to vector<2x128xf32>
    %c0_3 = arith.constant 0 : index
    %c0_4 = arith.constant 0 : index
    %2 = memref.load %arg3[%c0_3, %c0_4] : memref<4x2xf32, #tpu.memory_space<smem>>
    %3 = vector.broadcast %2 : f32 to vector<2x128xf32>
    %4 = arith.mulf %1, %3 : vector<2x128xf32>
    %c0_5 = arith.constant 0 : index
    %5 = memref.load %arg4[%c0_5] : memref<4xf32, #tpu.memory_space<smem>>
    %6 = vector.broadcast %5 : f32 to vector<2x128xf32>
    %7 = arith.addf %4, %6 : vector<2x128xf32>
    %c0_6 = arith.constant 0 : index
    %c1 = arith.constant 1 : index
    %c0_7 = arith.constant 0 : index
    %c0_8 = arith.constant 0 : index
    %8 = vector.load %arg2[%c0_6, %c1, %c0_7, %c0_8] : memref<1x4x2x128xf32, #tpu.memory_space<vmem>>, vector<1x1x2x128xf32>
    %9 = vector.shape_cast %8 : vector<1x1x2x128xf32> to vector<2x128xf32>
    %c0_9 = arith.constant 0 : index
    %c1_10 = arith.constant 1 : index
    %10 = memref.load %arg3[%c0_9, %c1_10] : memref<4x2xf32, #tpu.memory_space<smem>>
    %11 = vector.broadcast %10 : f32 to vector<2x128xf32>
    %12 = arith.mulf %9, %11 : vector<2x128xf32>
    %13 = arith.addf %7, %12 : vector<2x128xf32>
    %cst = arith.constant 0.000000e+00 : f32
    %14 = vector.broadcast %cst : f32 to vector<2x128xf32>
    %15 = arith.maximumf %13, %14 : vector<2x128xf32>
    %c0_11 = arith.constant 0 : index
    %c0_12 = arith.constant 0 : index
    %c0_13 = arith.constant 0 : index
    %c0_14 = arith.constant 0 : index
    %16 = vector.load %arg5[%c0_11, %c0_12, %c0_13, %c0_14] : memref<1x4x2x128xf32, #tpu.memory_space<vmem>>, vector<1x1x2x128xf32>
    %17 = vector.shape_cast %16 : vector<1x1x2x128xf32> to vector<2x128xf32>
    %18 = vector.shape_cast %15 : vector<2x128xf32> to vector<1x1x2x128xf32>
    tpu.vector_store %arg5[%c0_11, %c0_12, %c0_13, %c0_14], %18 {strides = array<i32>} : memref<1x4x2x128xf32, #tpu.memory_space<vmem>>, vector<1x1x2x128xf32>,
    %c0_15 = arith.constant 0 : index
    %c0_16 = arith.constant 0 : index
    %c0_17 = arith.constant 0 : index
    %c0_18 = arith.constant 0 : index
    %19 = vector.load %arg2[%c0_15, %c0_16, %c0_17, %c0_18] : memref<1x4x2x128xf32, #tpu.memory_space<vmem>>, vector<1x1x2x128xf32>
    %20 = vector.shape_cast %19 : vector<1x1x2x128xf32> to vector<2x128xf32>
    %c1_19 = arith.constant 1 : index
    %c0_20 = arith.constant 0 : index
    %21 = memref.load %arg3[%c1_19, %c0_20] : memref<4x2xf32, #tpu.memory_space<smem>>
    %22 = vector.broadcast %21 : f32 to vector<2x128xf32>
    %23 = arith.mulf %20, %22 : vector<2x128xf32>
    %c1_21 = arith.constant 1 : index
    %24 = memref.load %arg4[%c1_21] : memref<4xf32, #tpu.memory_space<smem>>
    %25 = vector.broadcast %24 : f32 to vector<2x128xf32>
    %26 = arith.addf %23, %25 : vector<2x128xf32>
    %c0_22 = arith.constant 0 : index
    %c1_23 = arith.constant 1 : index
    %c0_24 = arith.constant 0 : index
    %c0_25 = arith.constant 0 : index
    %27 = vector.load %arg2[%c0_22, %c1_23, %c0_24, %c0_25] : memref<1x4x2x128xf32, #tpu.memory_space<vmem>>, vector<1x1x2x128xf32>
    %28 = vector.shape_cast %27 : vector<1x1x2x128xf32> to vector<2x128xf32>
    %c1_26 = arith.constant 1 : index
    %c1_27 = arith.constant 1 : index
    %29 = memref.load %arg3[%c1_26, %c1_27] : memref<4x2xf32, #tpu.memory_space<smem>>
    %30 = vector.broadcast %29 : f32 to vector<2x128xf32>
    %31 = arith.mulf %28, %30 : vector<2x128xf32>
    %32 = arith.addf %26, %31 : vector<2x128xf32>
    %cst_28 = arith.constant 0.000000e+00 : f32
    %33 = vector.broadcast %cst_28 : f32 to vector<2x128xf32>
    %34 = arith.maximumf %32, %33 : vector<2x128xf32>
    %c0_29 = arith.constant 0 : index
    %c1_30 = arith.constant 1 : index
    %c0_31 = arith.constant 0 : index
    %c0_32 = arith.constant 0 : index
    %35 = vector.load %arg5[%c0_29, %c1_30, %c0_31, %c0_32] : memref<1x4x2x128xf32, #tpu.memory_space<vmem>>, vector<1x1x2x128xf32>
    %36 = vector.shape_cast %35 : vector<1x1x2x128xf32> to vector<2x128xf32>
    %37 = vector.shape_cast %34 : vector<2x128xf32> to vector<1x1x2x128xf32>
    tpu.vector_store %arg5[%c0_29, %c1_30, %c0_31, %c0_32], %37 {strides = array<i32>} : memref<1x4x2x128xf32, #tpu.memory_space<vmem>>, vector<1x1x2x128xf32>,
    %c0_33 = arith.constant 0 : index
    %c2 = arith.constant 2 : index
    %c0_34 = arith.constant 0 : index
    %c0_35 = arith.constant 0 : index
    %38 = vector.load %arg2[%c0_33, %c2, %c0_34, %c0_35] : memref<1x4x2x128xf32, #tpu.memory_space<vmem>>, vector<1x1x2x128xf32>
    %39 = vector.shape_cast %38 : vector<1x1x2x128xf32> to vector<2x128xf32>
    %c2_36 = arith.constant 2 : index
    %c0_37 = arith.constant 0 : index
    %40 = memref.load %arg3[%c2_36, %c0_37] : memref<4x2xf32, #tpu.memory_space<smem>>
    %41 = vector.broadcast %40 : f32 to vector<2x128xf32>
    %42 = arith.mulf %39, %41 : vector<2x128xf32>
    %c2_38 = arith.constant 2 : index
    %43 = memref.load %arg4[%c2_38] : memref<4xf32, #tpu.memory_space<smem>>
    %44 = vector.broadcast %43 : f32 to vector<2x128xf32>
    %45 = arith.addf %42, %44 : vector<2x128xf32>
    %c0_39 = arith.constant 0 : index
    %c3 = arith.constant 3 : index
    %c0_40 = arith.constant 0 : index
    %c0_41 = arith.constant 0 : index
    %46 = vector.load %arg2[%c0_39, %c3, %c0_40, %c0_41] : memref<1x4x2x128xf32, #tpu.memory_space<vmem>>, vector<1x1x2x128xf32>
    %47 = vector.shape_cast %46 : vector<1x1x2x128xf32> to vector<2x128xf32>
    %c2_42 = arith.constant 2 : index
    %c1_43 = arith.constant 1 : index
    %48 = memref.load %arg3[%c2_42, %c1_43] : memref<4x2xf32, #tpu.memory_space<smem>>
    %49 = vector.broadcast %48 : f32 to vector<2x128xf32>
    %50 = arith.mulf %47, %49 : vector<2x128xf32>
    %51 = arith.addf %45, %50 : vector<2x128xf32>
    %cst_44 = arith.constant 0.000000e+00 : f32
    %52 = vector.broadcast %cst_44 : f32 to vector<2x128xf32>
    %53 = arith.maximumf %51, %52 : vector<2x128xf32>
    %c0_45 = arith.constant 0 : index
    %c2_46 = arith.constant 2 : index
    %c0_47 = arith.constant 0 : index
    %c0_48 = arith.constant 0 : index
    %54 = vector.load %arg5[%c0_45, %c2_46, %c0_47, %c0_48] : memref<1x4x2x128xf32, #tpu.memory_space<vmem>>, vector<1x1x2x128xf32>
    %55 = vector.shape_cast %54 : vector<1x1x2x128xf32> to vector<2x128xf32>
    %56 = vector.shape_cast %53 : vector<2x128xf32> to vector<1x1x2x128xf32>
    tpu.vector_store %arg5[%c0_45, %c2_46, %c0_47, %c0_48], %56 {strides = array<i32>} : memref<1x4x2x128xf32, #tpu.memory_space<vmem>>, vector<1x1x2x128xf32>,
    %c0_49 = arith.constant 0 : index
    %c2_50 = arith.constant 2 : index
    %c0_51 = arith.constant 0 : index
    %c0_52 = arith.constant 0 : index
    %57 = vector.load %arg2[%c0_49, %c2_50, %c0_51, %c0_52] : memref<1x4x2x128xf32, #tpu.memory_space<vmem>>, vector<1x1x2x128xf32>
    %58 = vector.shape_cast %57 : vector<1x1x2x128xf32> to vector<2x128xf32>
    %c3_53 = arith.constant 3 : index
    %c0_54 = arith.constant 0 : index
    %59 = memref.load %arg3[%c3_53, %c0_54] : memref<4x2xf32, #tpu.memory_space<smem>>
    %60 = vector.broadcast %59 : f32 to vector<2x128xf32>
    %61 = arith.mulf %58, %60 : vector<2x128xf32>
    %c3_55 = arith.constant 3 : index
    %62 = memref.load %arg4[%c3_55] : memref<4xf32, #tpu.memory_space<smem>>
    %63 = vector.broadcast %62 : f32 to vector<2x128xf32>
    %64 = arith.addf %61, %63 : vector<2x128xf32>
    %c0_56 = arith.constant 0 : index
    %c3_57 = arith.constant 3 : index
    %c0_58 = arith.constant 0 : index
    %c0_59 = arith.constant 0 : index
    %65 = vector.load %arg2[%c0_56, %c3_57, %c0_58, %c0_59] : memref<1x4x2x128xf32, #tpu.memory_space<vmem>>, vector<1x1x2x128xf32>
    %66 = vector.shape_cast %65 : vector<1x1x2x128xf32> to vector<2x128xf32>
    %c3_60 = arith.constant 3 : index
    %c1_61 = arith.constant 1 : index
    %67 = memref.load %arg3[%c3_60, %c1_61] : memref<4x2xf32, #tpu.memory_space<smem>>
    %68 = vector.broadcast %67 : f32 to vector<2x128xf32>
    %69 = arith.mulf %66, %68 : vector<2x128xf32>
    %70 = arith.addf %64, %69 : vector<2x128xf32>
    %cst_62 = arith.constant 0.000000e+00 : f32
    %71 = vector.broadcast %cst_62 : f32 to vector<2x128xf32>
    %72 = arith.maximumf %70, %71 : vector<2x128xf32>
    %c0_63 = arith.constant 0 : index
    %c3_64 = arith.constant 3 : index
    %c0_65 = arith.constant 0 : index
    %c0_66 = arith.constant 0 : index
    %73 = vector.load %arg5[%c0_63, %c3_64, %c0_65, %c0_66] : memref<1x4x2x128xf32, #tpu.memory_space<vmem>>, vector<1x1x2x128xf32>
    %74 = vector.shape_cast %73 : vector<1x1x2x128xf32> to vector<2x128xf32>
    %75 = vector.shape_cast %72 : vector<2x128xf32> to vector<1x1x2x128xf32>
    tpu.vector_store %arg5[%c0_63, %c3_64, %c0_65, %c0_66], %75 {strides = array<i32>} : memref<1x4x2x128xf32, #tpu.memory_space<vmem>>, vector<1x1x2x128xf32>,
    return
  }
  func.func @transform_0(%arg0: i32, %arg1: i32) -> (i32, i32, i32, i32) {
    %c0_i32 = arith.constant 0 : i32
    %c0_i32_0 = arith.constant 0 : i32
    %c0_i32_1 = arith.constant 0 : i32
    return %arg0, %c0_i32, %arg1, %c0_i32_0 : i32, i32, i32, i32
  }
  func.func @transform_1(%arg0: i32, %arg1: i32) -> (i32, i32) {
    %c0_i32 = arith.constant 0 : i32
    %c0_i32_0 = arith.constant 0 : i32
    %c0_i32_1 = arith.constant 0 : i32
    return %c0_i32, %c0_i32_0 : i32, i32
  }
  func.func @transform_2(%arg0: i32, %arg1: i32) -> i32 {
    %c0_i32 = arith.constant 0 : i32
    %c0_i32_0 = arith.constant 0 : i32
    return %c0_i32 : i32
  }
  func.func @transform_3(%arg0: i32, %arg1: i32) -> (i32, i32, i32, i32) {
    %c0_i32 = arith.constant 0 : i32
    %c0_i32_0 = arith.constant 0 : i32
    %c0_i32_1 = arith.constant 0 : i32
    return %arg0, %c0_i32, %arg1, %c0_i32_0 : i32, i32, i32, i32
  }
}

</mosaic_0001>

<bundles_post_ra>
// kernel: block_forward.2
= control target key start
LH: loop header
LB: loop body
LE: loop exit
PB: predicated region body
PF: predicated region fallthrough
CT: control target
= control target key end

     0   :  { %s450_s6 = smov 0   ;;  %s452_s7 = smov 0   ;;  %s497_s0 = inlined_call_operand.vmem [shape: f32[2,4,2,128], index: 0, kind: input, shape index: {}]   ;;  %s498_s1 = inlined_call_operand.vmem [shape: f32[2,1,1,10], index: 1, kind: output, shape index: {}]  }
   0x1   :  { %s454_s8 = smov 0  }
   0x2 LB: > { %s23_s9 = sadd.s32 1, %s434_s7  ;;  %p363_p0 = scmp.ge.s32.totalorder %s438_s8, 1  ;;  %s438_s8 = sphi %s454_s8, %s11_s8   ;;  %s434_s7 = sphi %s452_s7, %s500_s7   ;;  %s430_s6 = sphi %s450_s6, %s499_s6  }
   0x3   : > { %p25_p1 = scmp.ge.s32.totalorder %s23_s9, 2  ;;  %p106_p2 = scmp.lt.s32.totalorder %s438_s8, 3 }
   0x5   : > { %s502_s9 = smov (%p25_p1, %s23_s9), 0  ;;  %p107_p3 = pnand %p363_p0, %p106_p2 }
   0x6   : > { %p130_p4 = scmp.lt.s32.totalorder (!%p107_p3), %s430_s6, 1  ;;  %vm145_vm0 = vcmask (!%p107_p3), 1041408   ;;  %vm268_vm1 = vcmask (!%p107_p3), 7168   ;;  %vm270_vm2 = vcmask (!%p107_p3), 15360   ;;  %vm272_vm3 = vcmask (!%p107_p3), 23552  }
   0x7   : > { %110 = sbr.rel (%p107_p3) target bundleno = 243 (0xf3), region = 24  ;;  %vm274_vm4 = vcmask (!%p107_p3), 31744   ;;  %vm276_vm5 = vcmask (!%p107_p3), 39936   ;;  %vm278_vm6 = vcmask (!%p107_p3), 48128   ;;  %vm280_vm7 = vcmask (!%p107_p3), 56320  }
   0x8   : > { %vm282_vm8 = vcmask (!%p107_p3), 64512   ;;  %vm284_vm9 = vcmask (!%p107_p3), 72704   ;;  %vm286_vm10 = vcmask (!%p107_p3), 73728  }
   0xe   : > { %s504_s6 = smov (!%p130_p4, %s430_s6), 1 }
   0xf   : > { %s371_s10 = sshll.u32 %s504_s6, 3  ;;  %s143_s25 = scalar_lea.vmem %s498_s1, %s504_s6 }
  0x10   : > { %s137_s13 = scalar_lea.vmem %s497_s0, %s371_s10 }
  0x11   : > { %v367_v0 = vld [vmem:[%s137_s13 + $0x4] sm:$0x3]  ;;  %v144_v1 = vld [vmem:[%s137_s13] sm:$0x3]  ;;  %v368_v2 = vld [vmem:[%s137_s13 + $0x6] sm:$0x3] }
  0x12   : > { %v172_v3 = vsel %vm145_vm0, %v367_v0, 0.0  ;;  %v146_v4 = vsel %vm145_vm0, %v144_v1, 0.0  ;;  %v366_v5 = vld [vmem:[%s137_s13 + $0x2] sm:$0x3]  ;;  %v185_v6 = vsel %vm145_vm0, %v368_v2, 0.0  ;;  %v196_v9 = vmul.f32 %v144_v1, %v144_v1 }
  0x13   : > { %173 = vadd.xlane.f32.xlu1 %v172_v3  ;;  %147 = vadd.xlane.f32.xlu0 %v146_v4  ;;  %v159_v7 = vsel %vm145_vm0, %v366_v5, 0.0  ;;  %v208_v8 = vmul.f32 %v366_v5, %v144_v1  ;;  %v232_v12 = vmul.f32 %v367_v0, %v367_v0  ;;  %v220_v13 = vmul.f32 %v366_v5, %v366_v5 }
  0x14   : > { %v197_v11 = vsel %vm145_vm0, %v196_v9, 0.0  ;;  %v256_v16 = vmul.f32 %v368_v2, %v368_v2  ;;  %v244_v17 = vmul.f32 %v368_v2, %v367_v0 }
  0x15   : > { %v209_v10 = vsel %vm145_vm0, %v208_v8, 0.0  ;;  %v233_v14 = vsel %vm145_vm0, %v232_v12, 0.0  ;;  %v221_v15 = vsel %vm145_vm0, %v220_v13, 0.0 }
  0x16   : > { %v257_v18 = vsel %vm145_vm0, %v256_v16, 0.0  ;;  %v245_v19 = vsel %vm145_vm0, %v244_v17, 0.0 }
  0x17   : > { %186 = vadd.xlane.f32.xlu1 %v185_v6  ;;  %160 = vadd.xlane.f32.xlu0 %v159_v7 }
  0x1b   : > { %210 = vadd.xlane.f32.xlu1 %v209_v10  ;;  %198 = vadd.xlane.f32.xlu0 %v197_v11 }
  0x1f   : > { %234 = vadd.xlane.f32.xlu1 %v233_v14  ;;  %222 = vadd.xlane.f32.xlu0 %v221_v15 }
  0x23   : > { %258 = vadd.xlane.f32.xlu1 %v257_v18  ;;  %246 = vadd.xlane.f32.xlu0 %v245_v19 }
  0xa0   : > { %v174_v20 = vpop.xlane.xlu1 %173  ;;  %v148_v21 = vpop.xlane.xlu0 %147 }
  0xa1   : > { %v175_v22 = vrot.slane %v174_v20, 4  ;;  %v149_v23 = vrot.slane %v148_v21, 4 }
  0xa3   : > { %v176_v24 = vadd.f32 %v175_v22, %v174_v20  ;;  %v150_v25 = vadd.f32 %v149_v23, %v148_v21 }
  0xa4   : > { %v187_v26 = vpop.xlane.xlu1 %186  ;;  %v161_v27 = vpop.xlane.xlu0 %160 }
  0xa5   : > { %v177_v28 = vrot.slane %v176_v24, 2  ;;  %v151_v29 = vrot.slane %v150_v25, 2  ;;  %v188_v30 = vrot.slane %v187_v26, 4  ;;  %v162_v31 = vrot.slane %v161_v27, 4 }
  0xa7   : > { %v189_v32 = vadd.f32 %v188_v30, %v187_v26  ;;  %v163_v33 = vadd.f32 %v162_v31, %v161_v27  ;;  %v152_v34 = vadd.f32 %v151_v29, %v150_v25  ;;  %v178_v37 = vadd.f32 %v177_v28, %v176_v24 }
  0xa8   : > { %v211_v35 = vpop.xlane.xlu1 %210  ;;  %v199_v36 = vpop.xlane.xlu0 %198 }
  0xa9   : > { %v190_v38 = vrot.slane %v189_v32, 2  ;;  %v164_v39 = vrot.slane %v163_v33, 2  ;;  %v212_v40 = vrot.slane %v211_v35, 4  ;;  %v200_v41 = vrot.slane %v199_v36, 4 }
  0xaa   : > { %v153_v42 = vrot.slane %v152_v34, 1  ;;  %v179_v50 = vrot.slane %v178_v37, 1 }
  0xab   : > { %v213_v43 = vadd.f32 %v212_v40, %v211_v35  ;;  %v201_v44 = vadd.f32 %v200_v41, %v199_v36  ;;  %v165_v45 = vadd.f32 %v164_v39, %v163_v33  ;;  %v191_v46 = vadd.f32 %v190_v38, %v189_v32 }
  0xac   : > { %v235_v47 = vpop.xlane.xlu1 %234  ;;  %v223_v48 = vpop.xlane.xlu0 %222  ;;  %v154_v49 = vadd.f32 %v153_v42, %v152_v34  ;;  %v180_v0 = vadd.f32 %v179_v50, %v178_v37 }
  0xad   : > { %v214_v51 = vrot.slane %v213_v43, 2  ;;  %v202_v52 = vrot.slane %v201_v44, 2  ;;  %v236_v53 = vrot.slane %v235_v47, 4  ;;  %v224_v54 = vrot.slane %v223_v48, 4 }
  0xae   : > { %372 = vpush %v154_v49  ;;  %v166_v55 = vrot.slane %v165_v45, 1  ;;  %v192_v56 = vrot.slane %v191_v46, 1 }
  0xaf   : > { %v237_v57 = vadd.f32 %v236_v53, %v235_v47  ;;  %v225_v58 = vadd.f32 %v224_v54, %v223_v48  ;;  %v203_v59 = vadd.f32 %v202_v52, %v201_v44  ;;  %v215_v60 = vadd.f32 %v214_v51, %v213_v43 }
  0xb0   : > { %v259_v61 = vpop.xlane.xlu1 %258  ;;  %v247_v62 = vpop.xlane.xlu0 %246  ;;  %v167_v63 = vadd.f32 %v166_v55, %v165_v45  ;;  %v193_v1 = vadd.f32 %v192_v56, %v191_v46 }
  0xb1   : > { %v238_v2 = vrot.slane %v237_v57, 2  ;;  %v226_v3 = vrot.slane %v225_v58, 2  ;;  %v260_v4 = vrot.slane %v259_v61, 4  ;;  %v248_v5 = vrot.slane %v247_v62, 4 }
  0xb2   : > { %374 = vpush %v167_v63  ;;  %v204_v6 = vrot.slane %v203_v59, 1  ;;  %v216_v7 = vrot.slane %v215_v60, 1 }
  0xb3   : > { %v261_v8 = vadd.f32 %v260_v4, %v259_v61  ;;  %v249_v9 = vadd.f32 %v248_v5, %v247_v62  ;;  %376 = vpush %v180_v0  ;;  %v227_v10 = vadd.f32 %v226_v3, %v225_v58  ;;  %v239_v11 = vadd.f32 %v238_v2, %v237_v57 }
  0xb4   : > { %378 = vpush %v193_v1  ;;  %v205_v12 = vadd.f32 %v204_v6, %v203_v59  ;;  %v217_v13 = vadd.f32 %v216_v7, %v215_v60 }
  0xb5   : > { %v262_v14 = vrot.slane %v261_v8, 2  ;;  %v250_v15 = vrot.slane %v249_v9, 2  ;;  %v228_v16 = vrot.slane %v227_v10, 1  ;;  %v240_v17 = vrot.slane %v239_v11, 1 }
  0xb6   : > { %380 = vpush %v205_v12 }
  0xb7   : > { %v263_v18 = vadd.f32 %v262_v14, %v261_v8  ;;  %v251_v19 = vadd.f32 %v250_v15, %v249_v9  ;;  %382 = vpush %v217_v13  ;;  %v229_v20 = vadd.f32 %v228_v16, %v227_v10  ;;  %v241_v21 = vadd.f32 %v240_v17, %v239_v11 }
  0xb9   : > { %384 = vpush %v229_v20  ;;  %v252_v22 = vrot.slane %v251_v19, 1  ;;  %v264_v23 = vrot.slane %v263_v18, 1 }
  0xba   : > { %386 = vpush %v241_v21 }
  0xbb   : > { %v253_v24 = vadd.f32 %v252_v22, %v251_v19  ;;  %v265_v25 = vadd.f32 %v264_v23, %v263_v18 }
  0xbd   : > { %388 = vpush %v253_v24 }
  0xbe   : > { %390 = vpush %v265_v25 }
  0xdf   : > { %s373_s14 = spop %372 }
  0xe0   : > { %v156_v26 = vstv %s373_s14 }
  0xe3   : > { %s375_s15 = spop %374 }
  0xe4   : > { %v169_v27 = vstv %s375_s15  ;;  %s377_s16 = spop %376 }
  0xe5   : > { %v269_v28 = vsel %vm268_vm1, %v156_v26, %v169_v27  ;;  %v182_v29 = vstv %s377_s16  ;;  %s379_s17 = spop %378 }
  0xe6   : > { %v271_v30 = vsel %vm270_vm2, %v269_v28, %v182_v29  ;;  %v195_v31 = vstv %s379_s17 }
  0xe7   : > { %v273_v32 = vsel %vm272_vm3, %v271_v30, %v195_v31  ;;  %s381_s18 = spop %380 }
  0xe8   : > { %v207_v33 = vstv %s381_s18  ;;  %s383_s19 = spop %382 }
  0xe9   : > { %v275_v34 = vsel %vm274_vm4, %v273_v32, %v207_v33  ;;  %v219_v35 = vstv %s383_s19 }
  0xea   : > { %s385_s20 = spop %384  ;;  %v277_v36 = vsel %vm276_vm5, %v275_v34, %v219_v35 }
  0xeb   : > { %v231_v37 = vstv %s385_s20  ;;  %s387_s21 = spop %386 }
  0xec   : > { %v279_v38 = vsel %vm278_vm6, %v277_v36, %v231_v37  ;;  %v243_v39 = vstv %s387_s21 }
  0xed   : > { %v281_v40 = vsel %vm280_vm7, %v279_v38, %v243_v39 }
  0xee   : > { %s389_s22 = spop %388 }
  0xef   : > { %v255_v41 = vstv %s389_s22  ;;  %s391_s26 = spop %390 }
  0xf0   : > { %v283_v42 = vsel %vm282_vm8, %v281_v40, %v255_v41  ;;  %v267_v43 = vstv %s391_s26 }
  0xf1   : > { %v285_v44 = vsel %vm284_vm9, %v283_v42, %v267_v43 }
  0xf2   : > { %287 = vst.msk [vmem:[%s143_s25] sm:$0x1] %vm286_vm10, %v285_v44 }
  0xf3 PF: > { %s11_s8 = sadd.s32 1, %s438_s8   ;;  %s499_s6 = smov %s434_s7 }
  0xf4   : > { %p8_p5 = scmp.ge.s32.totalorder %s11_s8, 4   ;;  %s500_s7 = smov %s502_s9 }
  0xf6   :  { %10 = sbr.rel (!%p8_p5) target bundleno = 2 (0x2), region = 57 }

// kernel: block_forward.3
= control target key start
LH: loop header
LB: loop body
LE: loop exit
PB: predicated region body
PF: predicated region fallthrough
CT: control target
= control target key end

     0   :  { %8 = vsyncpa [#allocation3], 0  ;;  %s651_s0 = inlined_call_operand.vmem [shape: f32[2,4,2,128], index: 0, kind: input, shape index: {}]   ;;  %s652_s1 = inlined_call_operand.vmem [shape: f32[4,2], index: 1, kind: input, shape index: {}]   ;;  %s653_s2 = inlined_call_operand.vmem [shape: f32[4], index: 2, kind: input, shape index: {}]   ;;  %s654_s3 = inlined_call_operand.vmem [shape: f32[2,4,2,128], index: 3, kind: output, shape index: {}]  }
   0x1   :  { %9 = vsyncpa [#allocation5], 0  ;;  %s562_s12 = smov 0   ;;  %s564_s13 = smov 0  }
   0x2   :  { %s566_s14 = smov 0  }
   0x3 LB: > { %s397_s15 = sadd.s32 4294967295, %s538_s14   ;;  %s27_s16 = sadd.s32 1, %s534_s13  ;;  %s538_s14 = sphi %s566_s14, %s15_s14   ;;  %s534_s13 = sphi %s564_s13, %s664_s13   ;;  %s530_s12 = sphi %s562_s12, %s663_s12  }
   0x4   : > { %p29_p0 = scmp.ge.s32.totalorder %s27_s16, 2  ;;  %p399_p1 = scmp.ge.s32.totalorder %s538_s14, 1 }
   0x5   : > { %p130_p2 = scmp.lt.s32.totalorder %s538_s14, 3  ;;  %p587_p4 = scmp.eq.s32.totalorder %s397_s15, 0 }
   0x6   : > { %s666_s16 = smov (%p29_p0, %s27_s16), 0  ;;  %s143_s21 = sshll.u32 %s652_s1, 4  ;;  %s144_s21 = int_to_ptr.vmem [resolvable:$true] %s143_s21 }
   0x7   : > { %p583_p3 = pnand %p399_p1, %p130_p2  ;;  %s154_s24 = sshll.u32 %s653_s2, 4  ;;  %s155_s24 = int_to_ptr.vmem [resolvable:$true] %s154_s24 }
   0x8   : > { %s659_s18 = scalar_select %p587_p4, 1, 0 }
   0x9   : > { %s658_s17 = scalar_select %p583_p3, 1, 0 }
   0xa   : > { %p441_p5 = pneg %p583_p3  ;;  %s478_s26 = scalar_lea.vmem %s144_s21, 64 }
   0xb   : > { %p479_p7 = scmp.ne.s32.totalorder %s144_s21, %s478_s26  ;;  %p486_p11 = scmp.lt.s32.totalorder %s144_s21, %s144_s21 }
   0xc   : > { %p601_p6 = pnand %p587_p4, %p441_p5  ;;  %p487_p12 = scmp.lt.s32.totalorder %s478_s26, %s478_s26 }
   0xe   : > { %p480_p8 = pneg %p601_p6  ;;  %p488_p13 = por %p487_p12, %p486_p11 }
  0x10   : > { %p481_p9 = pnand %p480_p8, %p479_p7 }
  0x12   : > { %p482_p10 = pneg %p481_p9 }
  0x14   : > { %p489_p0 = pnand %p488_p13, %p482_p10 }
  0x16   : > { %492 = shalt.err (!%p489_p0)
}
  0x17   : > { %s540_s27 = smov [#allocation2]   ;;  %s493_s28 = scalar_lea.vmem %s155_s24, 16 }
  0x18   : > { %444 = dma.vmem_to_smem (!%p601_p6), %s144_s21, 64, %s540_s27, [#allocation3]  }
  0x19   : > { %p494_p1 = scmp.ne.s32.totalorder %s155_s24, %s493_s28  ;;  %p501_p4 = scmp.lt.s32.totalorder %s155_s24, %s155_s24 }
  0x1a   : > { %p502_p3 = scmp.lt.s32.totalorder %s493_s28, %s493_s28 }
  0x1b   : > { %p496_p2 = pnand %p494_p1, %p480_p8 }
  0x1c   : > { %p503_p7 = por %p502_p3, %p501_p4 }
  0x1d   : > { %p497_p5 = pneg %p496_p2 }
  0x1f   : > { %p504_p9 = pnand %p503_p7, %p497_p5 }
  0x21   : > { %507 = shalt.err (!%p504_p9)
}
  0x22   : > { %s541_s29 = smov [#allocation4]   ;;  %p661_p10 = scmp.ne.s32.totalorder %s658_s17, 0 }
  0x23   : > { %447 = dma.vmem_to_smem (!%p601_p6), %s155_s24, 16, %s541_s29, [#allocation5]  }
  0x24   : > { %178 = sbr.rel (%p661_p10) target bundleno = 71 (0x47), region = 32  ;;  %p662_p11 = scmp.ne.s32.totalorder (!%p661_p10), %s659_s18, 0 }
  0x2b   : > { %521 = dma.done.wait (%p662_p11), [#allocation3], 64  }
  0x2c   : > { %523 = vsyncadd (%p662_p11), [#allocation3], 4294967232 }
  0x2d   : > { %525 = dma.done.wait (%p662_p11), [#allocation5], 16  }
  0x2e   : > { %527 = vsyncadd (%p662_p11), [#allocation5], 4294967280 }
  0x2f   : > { %188 = sfence }
  0x30   : > { %p213_p3 = scmp.lt.s32.totalorder %s530_s12, 1  ;;  %s230_s30 = sld [smem:[#allocation2]] }
  0x31   : > { %s233_s4 = sld [smem:[#allocation4]]  ;;  %s411_s5 = sld [smem:[#allocation2 + $0x1]] }
  0x32   : > { %s668_s12 = smov (!%p213_p3, %s530_s12), 1  ;;  %s412_s6 = sld [smem:[#allocation2 + $0x80]] }
  0x33   : > { %s413_s7 = sld [smem:[#allocation4 + $0x1]]  ;;  %s431_s8 = sshll.u32 %s668_s12, 3 }
  0x34   : > { %s415_s9 = sld [smem:[#allocation2 + $0x81]]  ;;  %s629_s15 = scalar_lea.vmem %s651_s0, %s431_s8 }
  0x35   : > { %v229_v0 = vld [vmem:[%s629_s15] sm:$0x3]  ;;  %v410_v2 = vld [vmem:[%s629_s15 + $0x2] sm:$0x3]  ;;  %s418_s17 = sld [smem:[#allocation2 + $0x100]]  ;;  %s419_s12 = sld [smem:[#allocation4 + $0x2]] }
  0x36   : > { %v231_v1 = vstv %s230_s30  ;;  %v244_v6 = vld [vmem:[%s629_s15] sm:$0x3]  ;;  %v414_v8 = vld [vmem:[%s629_s15 + $0x2] sm:$0x3]  ;;  %s421_s18 = sld [smem:[#allocation2 + $0x101]]  ;;  %s424_s19 = sld [smem:[#allocation2 + $0x180]] }
  0x37   : > { %v232_v3 = vmul.f32 %v231_v1, %v229_v0  ;;  %v234_v4 = vstv %s233_s4  ;;  %v239_v5 = vstv %s411_s5  ;;  %s425_s20 = sld [smem:[#allocation4 + $0x3]]  ;;  %s427_s21 = sld [smem:[#allocation2 + $0x181]]  ;;  %v417_v16 = vld [vmem:[%s629_s15 + $0x4] sm:$0x3]  ;;  %v420_v18 = vld [vmem:[%s629_s15 + $0x6] sm:$0x3] }
  0x38   : > { %v240_v7 = vmul.f32 %v410_v2, %v239_v5  ;;  %v246_v10 = vstv %s412_s6  ;;  %s228_s24 = scalar_lea.vmem %s654_s3, %s431_s8  ;;  %v423_v21 = vld [vmem:[%s629_s15 + $0x4] sm:$0x3]  ;;  %v426_v26 = vld [vmem:[%s629_s15 + $0x6] sm:$0x3] }
  0x39   : > { %v235_v9 = vadd.f32 %v234_v4, %v232_v3  ;;  %v249_v11 = vstv %s413_s7  ;;  %v247_v12 = vmul.f32 %v246_v10, %v244_v6 }
  0x3a   : > { %v253_v13 = vstv %s415_s9 }
  0x3b   : > { %v241_v14 = vadd.f32 %v240_v7, %v235_v9  ;;  %v254_v15 = vmul.f32 %v414_v8, %v253_v13  ;;  %v250_v17 = vadd.f32 %v249_v11, %v247_v12  ;;  %v262_v20 = vstv %s418_s17 }
  0x3c   : > { %v263_v23 = vmul.f32 %v417_v16, %v262_v20  ;;  %v265_v24 = vstv %s419_s12  ;;  %v270_v25 = vstv %s421_s18  ;;  %v278_v28 = vstv %s424_s19 }
  0x3d   : > { %v242_v19 = vmax.f32 %v241_v14, 0.0  ;;  %v255_v22 = vadd.f32 %v254_v15, %v250_v17  ;;  %v271_v27 = vmul.f32 %v420_v18, %v270_v25  ;;  %v281_v29 = vstv %s425_s20 }
  0x3e   : > { %v266_v31 = vadd.f32 %v265_v24, %v263_v23  ;;  %v279_v32 = vmul.f32 %v423_v21, %v278_v28  ;;  %v285_v33 = vstv %s427_s21 }
  0x3f   : > { %243 = vst [vmem:[%s228_s24] sm:$0x3] %v242_v19  ;;  %v256_v30 = vmax.f32 %v255_v22, 0.0  ;;  %v286_v34 = vmul.f32 %v426_v26, %v285_v33 }
  0x40   : > { %v272_v35 = vadd.f32 %v271_v27, %v266_v31  ;;  %v282_v36 = vadd.f32 %v281_v29, %v279_v32 }
  0x41   : > { %416 = vst [vmem:[%s228_s24 + $0x2] sm:$0x3] %v256_v30 }
  0x42   : > { %v273_v37 = vmax.f32 %v272_v35, 0.0  ;;  %v287_v38 = vadd.f32 %v286_v34, %v282_v36 }
  0x44   : > { %422 = vst [vmem:[%s228_s24 + $0x4] sm:$0x3] %v273_v37  ;;  %v288_v39 = vmax.f32 %v287_v38, 0.0 }
  0x46   : > { %428 = vst [vmem:[%s228_s24 + $0x6] sm:$0x3] %v288_v39 }
  0x47 PF: > { %s15_s14 = sadd.s32 1, %s538_s14   ;;  %s663_s12 = smov %s534_s13 }
  0x48   : > { %p12_p4 = scmp.ge.s32.totalorder %s15_s14, 4   ;;  %s664_s13 = smov %s666_s16 }
  0x4a   :  { %14 = sbr.rel (!%p12_p4) target bundleno = 3 (0x3), region = 77 }
  0x51   :  { %318 = vsyncpa [#allocation3], 1 }
  0x52   :  { %320 = vsyncpa [#allocation3 + $0x1], 1 }
  0x53   :  { %321 = vsyncpa [#allocation5], 1 }

</bundles_post_ra>
